<compile_context>
chip_gen: v5e
topology: v5e:2x2
jax: 0.10.0
libtpu: 0.0.40
codegen_flags: <defaults>
</compile_context>

<pallas_src>
import jax
import jax.numpy as jnp
import numpy as np
from jax.experimental import pallas as pl
from jax.experimental.pallas import tpu as pltpu


def _pick_tile(dim, pref):
    """Largest multiple of 8 that divides `dim` and is <= pref; falls back to full dim."""
    if dim % 8 == 0:
        t = min(pref, dim)
        t -= t % 8
        while t >= 8:
            if dim % t == 0:
                return t
            t -= 8
    return dim


def bert_classifier_kernel(vl_ref, emb_ref, wp_ref, bp_ref, wc_ref, bc_ref,
                           out_ref, acc_ref):
    """Fused: attention-mask gen -> masked-sum pool on the MXU (accumulated over S tiles)
    -> masked-mean -> pooler dense + tanh -> classifier dense (lane-padded)."""
    TB, TS, H = emb_ref.shape
    j = pl.program_id(1)                       # sequence-reduction step (last grid axis)

    @pl.when(j == 0)
    def _init():
        acc_ref[...] = jnp.zeros_like(acc_ref)

    # gen_attention_mask: position < valid_length, built as a cheap 2-D (TB, TS) mask.
    vl = vl_ref[...]                                                   # (TB, 1) int32
    pos = jax.lax.broadcasted_iota(jnp.int32, (TB, TS), 1) + j * TS    # (TB, TS)
    mask = (pos < vl).astype(jnp.bfloat16)                             # (TB, TS) 0/1

    # Masked S-reduction on the MXU: per-batch (1, TS) @ (TS, H), bf16 in, f32 accumulate.
    contrib = jax.lax.dot_general(
        mask[:, None, :], emb_ref[...],
        dimension_numbers=(((2,), (1,)), ((0,), (0,))),
        preferred_element_type=jnp.float32)                            # (TB, 1, H)
    acc_ref[...] += contrib[:, 0, :]                                   # (TB, H) f32

    @pl.when(j == pl.num_programs(1) - 1)
    def _finalize():
        # masked-mean denominator = min(valid_length, S), guarded against 0.
        s_total = pl.num_programs(1) * TS
        denom = jnp.maximum(jnp.minimum(vl, s_total), 1).astype(jnp.float32)  # (TB, 1)
        pooled = acc_ref[...] * pl.reciprocal(denom, approx=False)            # (TB, H)
        # BERT pooler: tanh(pooled @ W_pool + b_pool)  (bf16 weights, f32 accumulate)
        pooler = jnp.tanh(
            jnp.dot(pooled.astype(jnp.bfloat16), wp_ref[...],
                    preferred_element_type=jnp.float32) + bp_ref[...])        # (TB, H)
        # classifier Linear (weight pre-transposed + lane-padded to C_pad columns)
        logits = (jnp.dot(pooler.astype(jnp.bfloat16), wc_ref[...],
                          preferred_element_type=jnp.float32) + bc_ref[...])  # (TB, C_pad)
        out_ref[...] = logits.astype(out_ref.dtype)


def bert_classifier_forward(token_ids, valid_length, segment_ids, params,
                            *, tb_pref=16, ts_pref=1024):
    B, S = token_ids.shape
    H = params["tok_emb"].shape[1]
    C = params["w_cls"].shape[0]
    C_pad = max(128, ((C + 127) // 128) * 128)   # lane-dense classifier / output width

    # Glue: embedding-table lookups stand in for the opaque `bert` encoder input path.
    # TODO(synk): full BERT encoder stack (self-attention layers) is an external opaque
    # submodule and is not reproduced here.
    # TODO(synk): fuse this embedding gather into the kernel (scalar-prefetched token ids
    # + manual DMA row gather from HBM tables) so the (B,S,H) stream is never materialized
    # in HBM and re-read; that removes ~half the HBM traffic of this memory-bound kernel.
    emb = (params["tok_emb"][token_ids]
           + params["seg_emb"][segment_ids]).astype(jnp.bfloat16)       # (B, S, H) bf16
    vl = valid_length.astype(jnp.int32).reshape(B, 1)                   # (B, 1)

    # Weights in bf16 (halves resident VMEM, MXU-native); biases stay f32.
    w_pool = params["w_pool"].astype(jnp.bfloat16)                       # (H, H) bf16
    b_pool = params["b_pool"].reshape(1, H).astype(jnp.float32)          # (1, H) f32
    # PyTorch nn.Linear stores (C, H); transpose and zero-pad lanes to C_pad.
    w_cls_t = (jnp.zeros((H, C_pad), jnp.float32)
               .at[:, :C].set(params["w_cls"].T)).astype(jnp.bfloat16)   # (H, C_pad) bf16
    b_cls = jnp.zeros((1, C_pad), jnp.float32).at[:, :C].set(params["b_cls"])

    TB = _pick_tile(B, tb_pref)
    if B // TB < 2 and B >= 16:
        # keep >=2 batch tiles so the 'parallel' batch axis can split across v7x's 2 TCs
        TB = _pick_tile(B, max(8, B // 2))
    TS = _pick_tile(S, ts_pref)
    # v7x VMEM budget (64 MiB/TC): keep double-buffered emb tiles + resident weights
    # comfortably under ~40 MiB (also fine on v5e/v6e's 128 MiB).
    weight_bytes = (H * H + H * C_pad) * 2 + (H + C_pad) * 4 + 2 * TB * C_pad * 4
    while TS >= 16 and TS % 16 == 0 and (2 * TB * TS * H * 2 + weight_bytes) > 40 * 1024 * 1024:
        TS //= 2
    grid = (B // TB, S // TS)   # (parallel batch tiles, arbitrary sequence-reduction tiles)

    def run(single_buffer_weights):
        if single_buffer_weights:
            # constant index_map -> single VMEM buffer (no pointless double-buffering)
            def const_spec(shape):
                return pl.BlockSpec(shape, lambda i, j: (0,) * len(shape),
                                    pipeline_mode=pl.Buffered(1))
        else:
            def const_spec(shape):
                return pl.BlockSpec(shape, lambda i, j: (0,) * len(shape))

        return pl.pallas_call(
            bert_classifier_kernel,
            out_shape=jax.ShapeDtypeStruct((B, C_pad), jnp.float32),
            grid_spec=pltpu.PrefetchScalarGridSpec(
                num_scalar_prefetch=0,
                grid=grid,
                in_specs=[
                    pl.BlockSpec((TB, 1), lambda i, j: (i, 0)),           # valid_length
                    pl.BlockSpec((TB, TS, H), lambda i, j: (i, j, 0)),    # streamed embeddings
                    const_spec((H, H)),                                   # pooler W (resident)
                    const_spec((1, H)),                                   # pooler b (resident)
                    const_spec((H, C_pad)),                               # classifier W (resident)
                    const_spec((1, C_pad)),                               # classifier b (resident)
                ],
                out_specs=pl.BlockSpec((TB, C_pad), lambda i, j: (i, 0)),
                scratch_shapes=[pltpu.VMEM((TB, H), jnp.float32)],        # pooled-sum accumulator
            ),
            compiler_params=pltpu.CompilerParams(
                dimension_semantics=("parallel", "arbitrary"),
                vmem_limit_bytes=48 * 1024 * 1024,   # < physical on all chips incl. v7x (64 MiB)
            ),
        )(vl, emb, w_pool, b_pool, w_cls_t, b_cls)

    try:
        out = jax.block_until_ready(run(single_buffer_weights=True))
    except Exception:
        # Fallback if this Pallas version rejects single-buffered (Buffered(1)) operands.
        out = run(single_buffer_weights=False)
    return out[:, :C]


def reference_forward(token_ids, valid_length, segment_ids, params):
    """Pure-JAX reference with the same bf16 quantization as the kernel path."""
    S = token_ids.shape[1]
    emb = (params["tok_emb"][token_ids]
           + params["seg_emb"][segment_ids]).astype(jnp.bfloat16).astype(jnp.float32)
    pos = jnp.arange(S)[None, :]
    mask = (pos < valid_length[:, None]).astype(jnp.float32)
    denom = jnp.maximum(jnp.sum(mask, axis=1, keepdims=True), 1.0)
    pooled = jnp.sum(emb * mask[:, :, None], axis=1) / denom
    wp = params["w_pool"].astype(jnp.bfloat16).astype(jnp.float32)
    wc = params["w_cls"].astype(jnp.bfloat16).astype(jnp.float32)
    pooler = jnp.tanh(pooled.astype(jnp.bfloat16).astype(jnp.float32) @ wp
                      + params["b_pool"])
    return (pooler.astype(jnp.bfloat16).astype(jnp.float32) @ wc.T
            + params["b_cls"])


if __name__ == "__main__":
    # Small shapes consistent with the forward; chosen so the grid is 2x2 at test size.
    B, S, H, C = 16, 16, 32, 7
    VOCAB, N_SEG = 50, 2

    key = jax.random.PRNGKey(0)
    k = jax.random.split(key, 8)

    params = {
        "tok_emb": 0.02 * jax.random.normal(k[0], (VOCAB, H), jnp.float32),
        "seg_emb": 0.02 * jax.random.normal(k[1], (N_SEG, H), jnp.float32),
        "w_pool": 0.05 * jax.random.normal(k[2], (H, H), jnp.float32),
        "b_pool": 0.01 * jax.random.normal(k[3], (H,), jnp.float32),
        # nn.Linear(hidden_size, num_classes): weight shape (C, H), bias (C,)
        "w_cls": 0.05 * jax.random.normal(k[4], (C, H), jnp.float32),
        "b_cls": 0.01 * jax.random.normal(k[5], (C,), jnp.float32),
    }

    token_ids = jax.random.randint(k[6], (B, S), 0, VOCAB, dtype=jnp.int32)
    segment_ids = jnp.zeros((B, S), dtype=jnp.int32)
    valid_length = jax.random.randint(k[7], (B,), 1, S + 1, dtype=jnp.int32)

    logits = bert_classifier_forward(token_ids, valid_length, segment_ids, params,
                                     tb_pref=8, ts_pref=8)   # -> grid (2, 2) at test shapes
    logits = jax.block_until_ready(logits)

    ref = reference_forward(token_ids, valid_length, segment_ids, params)
    np.testing.assert_allclose(np.asarray(logits), np.asarray(ref), rtol=2e-3, atol=2e-4)

    assert logits.shape == (B, C)
    print("KERNEL_OK")
</pallas_src>

<mosaic_0001>
module attributes {stable_mosaic.version = 11 : i64} {
  func.func @bert_classifier_kernel(%arg0: i32, %arg1: i32, %arg2: memref<8x1xi32, #tpu.memory_space<vmem>>, %arg3: memref<8x8x32xbf16, #tpu.memory_space<vmem>>, %arg4: memref<32x32xbf16, #tpu.memory_space<vmem>>, %arg5: memref<1x32xf32, #tpu.memory_space<vmem>>, %arg6: memref<32x128xbf16, #tpu.memory_space<vmem>>, %arg7: memref<1x128xf32, #tpu.memory_space<vmem>>, %arg8: memref<8x128xf32, #tpu.memory_space<vmem>>, %arg9: memref<8x32xf32, #tpu.memory_space<vmem>>) attributes {dimension_semantics = [#tpu.dimension_semantics<parallel>, #tpu.dimension_semantics<arbitrary>], iteration_bounds = array<i64: 2, 2>, scalar_prefetch = 0 : i64, scratch_operands = 1 : i64, tpu.core_type = #tpu.core_type<tc>, window_params = [{transform_indices = @transform_0, window_bounds = array<i64: 8, 1>}, {transform_indices = @transform_1, window_bounds = array<i64: 8, 8, 32>}, {pipeline_mode = #tpu.pipeline_mode<synchronous>, transform_indices = @transform_2, window_bounds = array<i64: 32, 32>}, {pipeline_mode = #tpu.pipeline_mode<synchronous>, transform_indices = @transform_3, window_bounds = array<i64: 1, 32>}, {pipeline_mode = #tpu.pipeline_mode<synchronous>, transform_indices = @transform_4, window_bounds = array<i64: 32, 128>}, {pipeline_mode = #tpu.pipeline_mode<synchronous>, transform_indices = @transform_5, window_bounds = array<i64: 1, 128>}, {transform_indices = @transform_6, window_bounds = array<i64: 8, 128>}]} {
    %c0_i32 = arith.constant 0 : i32
    %0 = arith.cmpi eq, %arg1, %c0_i32 : i32
    %1 = arith.extui %0 : i1 to i32
    %c0_i32_0 = arith.constant 0 : i32
    %2 = arith.cmpi ne, %1, %c0_i32_0 : i32
    scf.if %2 {
      %cst_10 = arith.constant 0.000000e+00 : f32
      %23 = vector.broadcast %cst_10 : f32 to vector<8x32xf32>
      %c0_11 = arith.constant 0 : index
      %c0_12 = arith.constant 0 : index
      %24 = vector.load %arg9[%c0_11, %c0_12] : memref<8x32xf32, #tpu.memory_space<vmem>>, vector<8x32xf32>
      tpu.vector_store %arg9[%c0_11, %c0_12], %23 {strides = array<i32>} : memref<8x32xf32, #tpu.memory_space<vmem>>, vector<8x32xf32>,
    } else {
    }
    %c0 = arith.constant 0 : index
    %c0_1 = arith.constant 0 : index
    %3 = vector.load %arg2[%c0, %c0_1] : memref<8x1xi32, #tpu.memory_space<vmem>>, vector<8x1xi32>
    %4 = tpu.iota {dimensions = array<i32: 1>} : vector<8x8xi32>
    %c8_i32 = arith.constant 8 : i32
    %5 = arith.muli %arg1, %c8_i32 : i32
    %6 = vector.broadcast %5 : i32 to vector<8x8xi32>
    %7 = arith.addi %4, %6 : vector<8x8xi32>
    %8 = vector.broadcast %3 : vector<8x1xi32> to vector<8x8xi32>
    %9 = arith.cmpi slt, %7, %8 : vector<8x8xi32>
    %10 = arith.extui %9 : vector<8x8xi1> to vector<8x8xi32>
    %11 = arith.sitofp %10 : vector<8x8xi32> to vector<8x8xf32>
    %12 = arith.truncf %11 : vector<8x8xf32> to vector<8x8xbf16>
    %13 = vector.shape_cast %12 : vector<8x8xbf16> to vector<8x1x8xbf16>
    %c0_2 = arith.constant 0 : index
    %c0_3 = arith.constant 0 : index
    %c0_4 = arith.constant 0 : index
    %14 = vector.load %arg3[%c0_2, %c0_3, %c0_4] : memref<8x8x32xbf16, #tpu.memory_space<vmem>>, vector<8x8x32xbf16>
    %cst = arith.constant dense<0.000000e+00> : vector<8x1x32xf32>
    %15 = tpu.matmul %13, %14, %cst {dimension_numbers = #tpu.dot_dimension_numbers<[2], [1], [1], [2], [0, 0, 0, 1, 1, 2], [0], [0]>} : vector<8x1x8xbf16>, vector<8x8x32xbf16>, vector<8x1x32xf32> -> vector<8x1x32xf32>
    %c0_5 = arith.constant 0 : index
    %c0_6 = arith.constant 0 : index
    %16 = vector.load %arg9[%c0_5, %c0_6] : memref<8x32xf32, #tpu.memory_space<vmem>>, vector<8x32xf32>
    %17 = vector.shape_cast %15 : vector<8x1x32xf32> to vector<8x32xf32>
    %18 = arith.addf %16, %17 : vector<8x32xf32>
    %c0_7 = arith.constant 0 : index
    %c0_8 = arith.constant 0 : index
    %19 = vector.load %arg9[%c0_7, %c0_8] : memref<8x32xf32, #tpu.memory_space<vmem>>, vector<8x32xf32>
    tpu.vector_store %arg9[%c0_7, %c0_8], %18 {strides = array<i32>} : memref<8x32xf32, #tpu.memory_space<vmem>>, vector<8x32xf32>,
    %c1_i32 = arith.constant 1 : i32
    %20 = arith.cmpi eq, %arg1, %c1_i32 : i32
    %21 = arith.extui %20 : i1 to i32
    %c0_i32_9 = arith.constant 0 : i32
    %22 = arith.cmpi ne, %21, %c0_i32_9 : i32
    scf.if %22 {
      %c16_i32 = arith.constant 16 : i32
      %23 = vector.broadcast %c16_i32 : i32 to vector<8x1xi32>
      %24 = arith.minsi %3, %23 : vector<8x1xi32>
      %c1_i32_10 = arith.constant 1 : i32
      %25 = vector.broadcast %c1_i32_10 : i32 to vector<8x1xi32>
      %26 = arith.maxsi %24, %25 : vector<8x1xi32>
      %27 = arith.sitofp %26 : vector<8x1xi32> to vector<8x1xf32>
      %c0_11 = arith.constant 0 : index
      %c0_12 = arith.constant 0 : index
      %28 = vector.load %arg9[%c0_11, %c0_12] : memref<8x32xf32, #tpu.memory_space<vmem>>, vector<8x32xf32>
      %29 = tpu.reciprocal %27 : vector<8x1xf32> -> vector<8x1xf32>
      %30 = vector.broadcast %29 : vector<8x1xf32> to vector<8x32xf32>
      %31 = arith.mulf %28, %30 : vector<8x32xf32>
      %32 = arith.truncf %31 : vector<8x32xf32> to vector<8x32xbf16>
      %c0_13 = arith.constant 0 : index
      %c0_14 = arith.constant 0 : index
      %33 = vector.load %arg4[%c0_13, %c0_14] : memref<32x32xbf16, #tpu.memory_space<vmem>>, vector<32x32xbf16>
      %cst_15 = arith.constant dense<0.000000e+00> : vector<8x32xf32>
      %34 = tpu.matmul %32, %33, %cst_15 {dimension_numbers = #tpu.dot_dimension_numbers<[1], [0], [0], [1], [0, 0, 1, 1], [], []>} : vector<8x32xbf16>, vector<32x32xbf16>, vector<8x32xf32> -> vector<8x32xf32>
      %c0_16 = arith.constant 0 : index
      %c0_17 = arith.constant 0 : index
      %35 = vector.load %arg5[%c0_16, %c0_17] : memref<1x32xf32, #tpu.memory_space<vmem>>, vector<1x32xf32>
      %36 = vector.broadcast %35 : vector<1x32xf32> to vector<8x32xf32>
      %37 = arith.addf %34, %36 : vector<8x32xf32>
      %38 = math.tanh %37 : vector<8x32xf32>
      %39 = arith.truncf %38 : vector<8x32xf32> to vector<8x32xbf16>
      %c0_18 = arith.constant 0 : index
      %c0_19 = arith.constant 0 : index
      %40 = vector.load %arg6[%c0_18, %c0_19] : memref<32x128xbf16, #tpu.memory_space<vmem>>, vector<32x128xbf16>
      %cst_20 = arith.constant dense<0.000000e+00> : vector<8x128xf32>
      %41 = tpu.matmul %39, %40, %cst_20 {dimension_numbers = #tpu.dot_dimension_numbers<[1], [0], [0], [1], [0, 0, 1, 1], [], []>} : vector<8x32xbf16>, vector<32x128xbf16>, vector<8x128xf32> -> vector<8x128xf32>
      %c0_21 = arith.constant 0 : index
      %c0_22 = arith.constant 0 : index
      %42 = vector.load %arg7[%c0_21, %c0_22] : memref<1x128xf32, #tpu.memory_space<vmem>>, vector<1x128xf32>
      %43 = vector.broadcast %42 : vector<1x128xf32> to vector<8x128xf32>
      %44 = arith.addf %41, %43 : vector<8x128xf32>
      %c0_23 = arith.constant 0 : index
      %c0_24 = arith.constant 0 : index
      %45 = vector.load %arg8[%c0_23, %c0_24] : memref<8x128xf32, #tpu.memory_space<vmem>>, vector<8x128xf32>
      tpu.vector_store %arg8[%c0_23, %c0_24], %44 {strides = array<i32>} : memref<8x128xf32, #tpu.memory_space<vmem>>, vector<8x128xf32>,
    } else {
    }
    return
  }
  func.func @transform_0(%arg0: i32, %arg1: i32) -> (i32, i32) {
    %c0_i32 = arith.constant 0 : i32
    %c0_i32_0 = arith.constant 0 : i32
    return %arg0, %c0_i32 : i32, i32
  }
  func.func @transform_1(%arg0: i32, %arg1: i32) -> (i32, i32, i32) {
    %c0_i32 = arith.constant 0 : i32
    %c0_i32_0 = arith.constant 0 : i32
    return %arg0, %arg1, %c0_i32 : i32, i32, i32
  }
  func.func @transform_2(%arg0: i32, %arg1: i32) -> (i32, i32) {
    %c0_i32 = arith.constant 0 : i32
    %c0_i32_0 = arith.constant 0 : i32
    %c0_i32_1 = arith.constant 0 : i32
    return %c0_i32, %c0_i32_0 : i32, i32
  }
  func.func @transform_3(%arg0: i32, %arg1: i32) -> (i32, i32) {
    %c0_i32 = arith.constant 0 : i32
    %c0_i32_0 = arith.constant 0 : i32
    %c0_i32_1 = arith.constant 0 : i32
    return %c0_i32, %c0_i32_0 : i32, i32
  }
  func.func @transform_4(%arg0: i32, %arg1: i32) -> (i32, i32) {
    %c0_i32 = arith.constant 0 : i32
    %c0_i32_0 = arith.constant 0 : i32
    %c0_i32_1 = arith.constant 0 : i32
    return %c0_i32, %c0_i32_0 : i32, i32
  }
  func.func @transform_5(%arg0: i32, %arg1: i32) -> (i32, i32) {
    %c0_i32 = arith.constant 0 : i32
    %c0_i32_0 = arith.constant 0 : i32
    %c0_i32_1 = arith.constant 0 : i32
    return %c0_i32, %c0_i32_0 : i32, i32
  }
  func.func @transform_6(%arg0: i32, %arg1: i32) -> (i32, i32) {
    %c0_i32 = arith.constant 0 : i32
    %c0_i32_0 = arith.constant 0 : i32
    return %arg0, %c0_i32 : i32, i32
  }
}

module attributes {stable_mosaic.version = 11 : i64} {
  func.func @bert_classifier_kernel(%arg0: i32, %arg1: i32, %arg2: memref<8x1xi32, #tpu.memory_space<vmem>>, %arg3: memref<8x8x32xbf16, #tpu.memory_space<vmem>>, %arg4: memref<32x32xbf16, #tpu.memory_space<vmem>>, %arg5: memref<1x32xf32, #tpu.memory_space<vmem>>, %arg6: memref<32x128xbf16, #tpu.memory_space<vmem>>, %arg7: memref<1x128xf32, #tpu.memory_space<vmem>>, %arg8: memref<8x128xf32, #tpu.memory_space<vmem>>, %arg9: memref<8x32xf32, #tpu.memory_space<vmem>>) attributes {dimension_semantics = [#tpu.dimension_semantics<parallel>, #tpu.dimension_semantics<arbitrary>], iteration_bounds = array<i64: 2, 2>, scalar_prefetch = 0 : i64, scratch_operands = 1 : i64, tpu.core_type = #tpu.core_type<tc>, window_params = [{transform_indices = @transform_0, window_bounds = array<i64: 8, 1>}, {transform_indices = @transform_1, window_bounds = array<i64: 8, 8, 32>}, {pipeline_mode = #tpu.pipeline_mode<synchronous>, transform_indices = @transform_2, window_bounds = array<i64: 32, 32>}, {pipeline_mode = #tpu.pipeline_mode<synchronous>, transform_indices = @transform_3, window_bounds = array<i64: 1, 32>}, {pipeline_mode = #tpu.pipeline_mode<synchronous>, transform_indices = @transform_4, window_bounds = array<i64: 32, 128>}, {pipeline_mode = #tpu.pipeline_mode<synchronous>, transform_indices = @transform_5, window_bounds = array<i64: 1, 128>}, {transform_indices = @transform_6, window_bounds = array<i64: 8, 128>}]} {
    %c0_i32 = arith.constant 0 : i32
    %0 = arith.cmpi eq, %arg1, %c0_i32 : i32
    %1 = arith.extui %0 : i1 to i32
    %c0_i32_0 = arith.constant 0 : i32
    %2 = arith.cmpi ne, %1, %c0_i32_0 : i32
    scf.if %2 {
      %cst_10 = arith.constant 0.000000e+00 : f32
      %23 = vector.broadcast %cst_10 : f32 to vector<8x32xf32>
      %c0_11 = arith.constant 0 : index
      %c0_12 = arith.constant 0 : index
      %24 = vector.load %arg9[%c0_11, %c0_12] : memref<8x32xf32, #tpu.memory_space<vmem>>, vector<8x32xf32>
      tpu.vector_store %arg9[%c0_11, %c0_12], %23 {strides = array<i32>} : memref<8x32xf32, #tpu.memory_space<vmem>>, vector<8x32xf32>,
    } else {
    }
    %c0 = arith.constant 0 : index
    %c0_1 = arith.constant 0 : index
    %3 = vector.load %arg2[%c0, %c0_1] : memref<8x1xi32, #tpu.memory_space<vmem>>, vector<8x1xi32>
    %4 = tpu.iota {dimensions = array<i32: 1>} : vector<8x8xi32>
    %c8_i32 = arith.constant 8 : i32
    %5 = arith.muli %arg1, %c8_i32 : i32
    %6 = vector.broadcast %5 : i32 to vector<8x8xi32>
    %7 = arith.addi %4, %6 : vector<8x8xi32>
    %8 = vector.broadcast %3 : vector<8x1xi32> to vector<8x8xi32>
    %9 = arith.cmpi slt, %7, %8 : vector<8x8xi32>
    %10 = arith.extui %9 : vector<8x8xi1> to vector<8x8xi32>
    %11 = arith.sitofp %10 : vector<8x8xi32> to vector<8x8xf32>
    %12 = arith.truncf %11 : vector<8x8xf32> to vector<8x8xbf16>
    %13 = vector.shape_cast %12 : vector<8x8xbf16> to vector<8x1x8xbf16>
    %c0_2 = arith.constant 0 : index
    %c0_3 = arith.constant 0 : index
    %c0_4 = arith.constant 0 : index
    %14 = vector.load %arg3[%c0_2, %c0_3, %c0_4] : memref<8x8x32xbf16, #tpu.memory_space<vmem>>, vector<8x8x32xbf16>
    %cst = arith.constant dense<0.000000e+00> : vector<8x1x32xf32>
    %15 = tpu.matmul %13, %14, %cst {dimension_numbers = #tpu.dot_dimension_numbers<[2], [1], [1], [2], [0, 0, 0, 1, 1, 2], [0], [0]>} : vector<8x1x8xbf16>, vector<8x8x32xbf16>, vector<8x1x32xf32> -> vector<8x1x32xf32>
    %c0_5 = arith.constant 0 : index
    %c0_6 = arith.constant 0 : index
    %16 = vector.load %arg9[%c0_5, %c0_6] : memref<8x32xf32, #tpu.memory_space<vmem>>, vector<8x32xf32>
    %17 = vector.shape_cast %15 : vector<8x1x32xf32> to vector<8x32xf32>
    %18 = arith.addf %16, %17 : vector<8x32xf32>
    %c0_7 = arith.constant 0 : index
    %c0_8 = arith.constant 0 : index
    %19 = vector.load %arg9[%c0_7, %c0_8] : memref<8x32xf32, #tpu.memory_space<vmem>>, vector<8x32xf32>
    tpu.vector_store %arg9[%c0_7, %c0_8], %18 {strides = array<i32>} : memref<8x32xf32, #tpu.memory_space<vmem>>, vector<8x32xf32>,
    %c1_i32 = arith.constant 1 : i32
    %20 = arith.cmpi eq, %arg1, %c1_i32 : i32
    %21 = arith.extui %20 : i1 to i32
    %c0_i32_9 = arith.constant 0 : i32
    %22 = arith.cmpi ne, %21, %c0_i32_9 : i32
    scf.if %22 {
      %c16_i32 = arith.constant 16 : i32
      %23 = vector.broadcast %c16_i32 : i32 to vector<8x1xi32>
      %24 = arith.minsi %3, %23 : vector<8x1xi32>
      %c1_i32_10 = arith.constant 1 : i32
      %25 = vector.broadcast %c1_i32_10 : i32 to vector<8x1xi32>
      %26 = arith.maxsi %24, %25 : vector<8x1xi32>
      %27 = arith.sitofp %26 : vector<8x1xi32> to vector<8x1xf32>
      %c0_11 = arith.constant 0 : index
      %c0_12 = arith.constant 0 : index
      %28 = vector.load %arg9[%c0_11, %c0_12] : memref<8x32xf32, #tpu.memory_space<vmem>>, vector<8x32xf32>
      %29 = tpu.reciprocal %27 : vector<8x1xf32> -> vector<8x1xf32>
      %30 = vector.broadcast %29 : vector<8x1xf32> to vector<8x32xf32>
      %31 = arith.mulf %28, %30 : vector<8x32xf32>
      %32 = arith.truncf %31 : vector<8x32xf32> to vector<8x32xbf16>
      %c0_13 = arith.constant 0 : index
      %c0_14 = arith.constant 0 : index
      %33 = vector.load %arg4[%c0_13, %c0_14] : memref<32x32xbf16, #tpu.memory_space<vmem>>, vector<32x32xbf16>
      %cst_15 = arith.constant dense<0.000000e+00> : vector<8x32xf32>
      %34 = tpu.matmul %32, %33, %cst_15 {dimension_numbers = #tpu.dot_dimension_numbers<[1], [0], [0], [1], [0, 0, 1, 1], [], []>} : vector<8x32xbf16>, vector<32x32xbf16>, vector<8x32xf32> -> vector<8x32xf32>
      %c0_16 = arith.constant 0 : index
      %c0_17 = arith.constant 0 : index
      %35 = vector.load %arg5[%c0_16, %c0_17] : memref<1x32xf32, #tpu.memory_space<vmem>>, vector<1x32xf32>
      %36 = vector.broadcast %35 : vector<1x32xf32> to vector<8x32xf32>
      %37 = arith.addf %34, %36 : vector<8x32xf32>
      %38 = math.tanh %37 : vector<8x32xf32>
      %39 = arith.truncf %38 : vector<8x32xf32> to vector<8x32xbf16>
      %c0_18 = arith.constant 0 : index
      %c0_19 = arith.constant 0 : index
      %40 = vector.load %arg6[%c0_18, %c0_19] : memref<32x128xbf16, #tpu.memory_space<vmem>>, vector<32x128xbf16>
      %cst_20 = arith.constant dense<0.000000e+00> : vector<8x128xf32>
      %41 = tpu.matmul %39, %40, %cst_20 {dimension_numbers = #tpu.dot_dimension_numbers<[1], [0], [0], [1], [0, 0, 1, 1], [], []>} : vector<8x32xbf16>, vector<32x128xbf16>, vector<8x128xf32> -> vector<8x128xf32>
      %c0_21 = arith.constant 0 : index
      %c0_22 = arith.constant 0 : index
      %42 = vector.load %arg7[%c0_21, %c0_22] : memref<1x128xf32, #tpu.memory_space<vmem>>, vector<1x128xf32>
      %43 = vector.broadcast %42 : vector<1x128xf32> to vector<8x128xf32>
      %44 = arith.addf %41, %43 : vector<8x128xf32>
      %c0_23 = arith.constant 0 : index
      %c0_24 = arith.constant 0 : index
      %45 = vector.load %arg8[%c0_23, %c0_24] : memref<8x128xf32, #tpu.memory_space<vmem>>, vector<8x128xf32>
      tpu.vector_store %arg8[%c0_23, %c0_24], %44 {strides = array<i32>} : memref<8x128xf32, #tpu.memory_space<vmem>>, vector<8x128xf32>,
    } else {
    }
    return
  }
  func.func @transform_0(%arg0: i32, %arg1: i32) -> (i32, i32) {
    %c0_i32 = arith.constant 0 : i32
    %c0_i32_0 = arith.constant 0 : i32
    return %arg0, %c0_i32 : i32, i32
  }
  func.func @transform_1(%arg0: i32, %arg1: i32) -> (i32, i32, i32) {
    %c0_i32 = arith.constant 0 : i32
    %c0_i32_0 = arith.constant 0 : i32
    return %arg0, %arg1, %c0_i32 : i32, i32, i32
  }
  func.func @transform_2(%arg0: i32, %arg1: i32) -> (i32, i32) {
    %c0_i32 = arith.constant 0 : i32
    %c0_i32_0 = arith.constant 0 : i32
    %c0_i32_1 = arith.constant 0 : i32
    return %c0_i32, %c0_i32_0 : i32, i32
  }
  func.func @transform_3(%arg0: i32, %arg1: i32) -> (i32, i32) {
    %c0_i32 = arith.constant 0 : i32
    %c0_i32_0 = arith.constant 0 : i32
    %c0_i32_1 = arith.constant 0 : i32
    return %c0_i32, %c0_i32_0 : i32, i32
  }
  func.func @transform_4(%arg0: i32, %arg1: i32) -> (i32, i32) {
    %c0_i32 = arith.constant 0 : i32
    %c0_i32_0 = arith.constant 0 : i32
    %c0_i32_1 = arith.constant 0 : i32
    return %c0_i32, %c0_i32_0 : i32, i32
  }
  func.func @transform_5(%arg0: i32, %arg1: i32) -> (i32, i32) {
    %c0_i32 = arith.constant 0 : i32
    %c0_i32_0 = arith.constant 0 : i32
    %c0_i32_1 = arith.constant 0 : i32
    return %c0_i32, %c0_i32_0 : i32, i32
  }
  func.func @transform_6(%arg0: i32, %arg1: i32) -> (i32, i32) {
    %c0_i32 = arith.constant 0 : i32
    %c0_i32_0 = arith.constant 0 : i32
    return %arg0, %c0_i32 : i32, i32
  }
}

</mosaic_0001>

<bundles_post_ra>
// kernel: tpu_custom_call.1
= control target key start
LH: loop header
LB: loop body
LE: loop exit
PB: predicated region body
PF: predicated region fallthrough
CT: control target
= control target key end

     0   :  { %s1489_s0 = inlined_call_operand.vmem [shape: s32[16,1], index: 0, kind: input, shape index: {}]   ;;  %s1490_s1 = inlined_call_operand.hbm [shape: bf16[16,16,32], index: 1, kind: input, shape index: {}]   ;;  %s1491_s2 = inlined_call_operand.vmem [shape: bf16[32,32], index: 2, kind: input, shape index: {}]   ;;  %s1492_s3 = inlined_call_operand.vmem [shape: f32[1,32], index: 3, kind: input, shape index: {}]   ;;  %s1493_s4 = inlined_call_operand.hbm [shape: bf16[32,128], index: 4, kind: input, shape index: {}]   ;;  %s1494_s5 = inlined_call_operand.vmem [shape: f32[1,128], index: 5, kind: input, shape index: {}]   ;;  %s1495_s6 = inlined_call_operand.hbm [shape: f32[16,128], index: 6, kind: output, shape index: {}]  }
   0x1   :  { %1507 = sst [smem:[#allocation18_spill]] %s1489_s0 }
   0x2   :  { %1508 = sst [smem:[#allocation19_spill]] %s1491_s2 }
   0x3   :  { %1509 = sst [smem:[#allocation20_spill]] %s1492_s3 }
   0x4   :  { %1510 = sst [smem:[#allocation21_spill]] %s1493_s4 }
   0x5   :  { %1511 = sst [smem:[#allocation22_spill]] %s1494_s5 }
   0x6   :  { %1512 = sst [smem:[#allocation23_spill]] %s1495_s6 }
   0x7   :  { %11 = vsyncpa [#allocation4], 0 }
   0x8   :  { %13 = vsyncpa [#allocation4 + $0x1], 0 }
   0x9   :  { %14 = vsyncpa [#allocation7], 0 }
   0xa   :  { %15 = vsyncpa [#allocation5], 0 }
   0xb   :  { %17 = vsyncpa [#allocation5 + $0x1], 0  ;;  %s1222_s21 = smov 0   ;;  %s1224_s22 = smov 0  }
   0xc   :  { %s1226_s23 = smov 0   ;;  %s1228_s24 = smov 0  }
   0xd   :  { %s1230_s25 = smov 0   ;;  %s1232_s26 = smov 0  }
   0xe   :  { %s1234_s27 = smov 0   ;;  %s1236_s28 = smov 0  }
   0xf   :  { %s1238_s29 = smov 0   ;;  %s1240_s30 = smov 0  }
  0x10   :  { %s1242_s7 = smov 0  }
  0x11 LB: > { %1513 = sst [smem:[#allocation12_spill]] %s1137_s21  ;;  %s806_s8 = sadd.s32 4294967295, %s1177_s7   ;;  %s1177_s7 = sphi %s1242_s7, %s23_s7   ;;  %s1173_s30 = sphi %s1240_s30, %s1551_s30   ;;  %s1169_s29 = sphi %s1238_s29, %s1550_s29   ;;  %s1165_s28 = sphi %s1236_s28, %s1549_s28   ;;  %s1161_s27 = sphi %s1234_s27, %s1548_s27   ;;  %s1157_s26 = sphi %s1232_s26, %s1547_s26   ;;  %s1153_s25 = sphi %s1230_s25, %s1546_s25   ;;  %s1149_s24 = sphi %s1228_s24, %s1545_s24   ;;  %s1145_s23 = sphi %s1226_s23, %s1544_s23   ;;  %s1141_s22 = sphi %s1224_s22, %s1543_s22   ;;  %s1137_s21 = sphi %s1222_s21, %s1542_s21  }
  0x12   : > { %1514 = sst [smem:[#allocation13_spill]] %s1161_s27  ;;  %s807_s9 = sadd.s32 4294967294, %s1177_s7  }
  0x13   : > { %p83_p0 = scmp.ne.s32.totalorder %s1153_s25, %s1149_s24  ;;  %p1278_p1 = scmp.eq.s32.totalorder %s806_s8, 0 }
  0x14   : > { %p190_p2 = scmp.ne.s32.totalorder %s1145_s23, %s1141_s22  ;;  %p191_p3 = scmp.eq.s32.totalorder %s806_s8, 3 }
  0x15   : > { %p1286_p4 = por %p1278_p1, %p83_p0  ;;  %p196_p5 = scmp.ne.s32.totalorder %s1141_s22, %s1137_s21 }
  0x16   : > { %p1292_p6 = por %p191_p3, %p190_p2  ;;  %p197_p7 = scmp.eq.s32.totalorder %s807_s9, 3 }
  0x17   : > { %p808_p8 = scmp.ge.s32.totalorder %s1177_s7, 1  ;;  %p204_p9 = scmp.lt.s32.totalorder %s1177_s7, 5 }
  0x18   : > { %s1517_s12 = scalar_select %p1292_p6, 1, 0 }
  0x19   : > { %p1298_p10 = por %p197_p7, %p196_p5  ;;  %p1302_p11 = pnand %p808_p8, %p204_p9 }
  0x1a   : > { %1518 = sst [smem:[#allocation14_spill]] %s1517_s12  ;;  %s1179_s18 = smov [#allocation6]  }
  0x1b   : > { %s1519_s13 = scalar_select %p1298_p10, 1, 0 }
  0x1c   : > { %s1522_s4 = sld [smem:[#allocation21_spill]]  ;;  %p871_p12 = pneg %p1302_p11 }
  0x1d   : > { %1520 = sst [smem:[#allocation15_spill]] %s1519_s13  ;;  %s223_s19 = sshll.u32 %s1179_s18, 4  ;;  %s224_s19 = int_to_ptr.vmem [resolvable:$true] %s223_s19 }
  0x1e   : > { %p872_p13 = pnand %p871_p12, %p1278_p1  ;;  %s1496_s20 = smov 64  }
  0x1f   : > { %s1497_s24 = smov 4   ;;  %s32_s8 = sadd.s32 1, %s1169_s29 }
  0x20   : > { %s35_s9 = sadd.s32 1, %s1173_s30  ;;  %p33_p0 = scmp.ge.s32.totalorder %s32_s8, 2 }
  0x21   : > { %s70_s15 = sadd.s32 1, %s1157_s26  ;;  %p77_p2 = scmp.ne.s32.totalorder %s1157_s26, %s1153_s25 }
  0x22   : > { %s221_s17 = sshll.u32 %s1522_s4, 4  ;;  %p78_p3 = scmp.eq.s32.totalorder %s1177_s7, 0  ;;  %s222_s17 = int_to_ptr.hbm [resolvable:$true] %s221_s17 }
  0x23   : > { %874 = dma.hbm_to_vmem [thread:$0]  (!%p872_p13), %s222_s17, 256, %s224_s19, [#allocation7], %s1496_s20, %s1496_s20, %s1497_s24  }
  0x24   : > { %s1553_s8 = smov (%p33_p0, %s32_s8), 0  ;;  %s1555_s9 = smov (!%p33_p0, %s35_s9), %s1173_s30 }
  0x25   : > { %1523 = sst [smem:[#allocation16_spill]] %s1553_s8  ;;  %s66_s16 = ssub.s32 %s1169_s29, %s1553_s8 }
  0x26   : > { %p1327_p5 = por %p78_p3, %p77_p2  ;;  %p37_p7 = scmp.ge.s32.totalorder %s1555_s9, 2 }
  0x27   : > { %s180_s17 = sadd.s32 1, %s1145_s23  ;;  %p884_p8 = scmp.lt.s32.totalorder %s1177_s7, 4 }
  0x28   : > { %s247_s19 = sand.u32 1, %s1157_s26   ;;  %s1557_s9 = smov (%p37_p7, %s1555_s9), 0 }
  0x29   : > { %1525 = sst [smem:[#allocation17_spill]] %s1557_s9  ;;  %s811_s20 = sshll.u32 %s247_s19, 5 }
  0x2a   : > { %s65_s24 = ssub.s32 %s1173_s30, %s1557_s9  ;;  %s858_s13 = sshll.u32 %s1173_s30, 4 }
  0x2b   : > { %s67_s4 = sor.u32 %s66_s16, %s65_s24  ;;  %p178_p9 = scmp.eq.s32.totalorder %s65_s24, 0 }
  0x2c   : > { %p68_p12 = scmp.eq.s32.totalorder %s67_s4, 0  ;;  %s256_s6 = sadd.s32 %s1169_s29, %s858_s13 }
  0x2d   : > { %s1340_s8 = scalar_select %p178_p9, %s1145_s23, %s180_s17  }
  0x2e   : > { %s1343_s21 = scalar_select %p68_p12, %s1157_s26, %s70_s15  }
  0x2f   : > { %s251_s12 = scalar_lea.vmem [#allocation3], %s811_s20  ;;  %s814_s3 = sshll.u32 %s256_s6, 2 }
  0x30   : > { %s261_s5 = sshll.u32 %s251_s12, 4  ;;  %s258_s0 = scalar_lea.hbm %s1490_s1, %s814_s3  ;;  %s262_s5 = int_to_ptr.vmem [resolvable:$true] %s261_s5 }
  0x31   : > { %p876_p13 = pnand %p884_p8, %p1327_p5  ;;  %s259_s16 = sshll.u32 %s258_s0, 4  ;;  %s260_s16 = int_to_ptr.hbm [resolvable:$true] %s259_s16 }
  0x32   : > { %s248_s4 = scalar_lea.sflag [#allocation4], %s247_s19  ;;  %s1182_s24 = smov 128  }
  0x33   : > { %s1526_s17 = smov 4   ;;  %s1527_s9 = smov 64  }
  0x34   : > { %878 = dma.hbm_to_vmem [thread:$0]  (!%p876_p13), %s260_s16, 512, %s262_s5, %s248_s4, %s1182_s24, %s1527_s9, %s1526_s17  }
  0x35   : > { %273 = sbr.rel (%p1302_p11) target bundleno = 800 (0x320), region = 44  ;;  %s275_s6 = sand.u32 (!%p1302_p11), 1, %s1153_s25  }
  0x36   : > { %s816_s12 = sshll.u32 (!%p1302_p11), %s275_s6, 5  ;;  %s276_s13 = scalar_lea.sflag (!%p1302_p11), [#allocation4], %s275_s6 }
  0x37   : > { %s1358_s2 = scalar_lea.vmem (!%p1302_p11), [#allocation3], %s816_s12 }
  0x3a   : > { %1124 = dma.done.wait (%p1286_p4), %s276_s13, 512  }
  0x3b   : > { %1126 = vsyncadd (%p1286_p4), %s276_s13, 4294966784 }
  0x3c   : > { %1128 = dma.done.wait (%p1278_p1), [#allocation7], 256  }
  0x3d   : > { %1130 = vsyncadd (%p1278_p1), [#allocation7], 4294967040  ;;  %s315_s0 = sand.u32 1, %s1141_s22   ;;  %p318_p11 = scmp.lt.s32.totalorder %s1165_s28, 1 }
  0x3e   : > { %s1372_s3 = sshll.u32 %s315_s0, 3  ;;  %s1528_s20 = sld [smem:[#allocation18_spill]] }
  0x3f   : > { %s319_s5 = scalar_select %p318_p11, %s1165_s28, 1 }
  0x40   : > { %s317_s15 = scalar_lea.vmem [#allocation8], %s1372_s3  ;;  %s1529_s18 = sld [smem:[#allocation13_spill]] }
  0x41   : > { %s819_s27 = sshll.u32 %s319_s5, 3 }
  0x44   : > { %s321_s9 = scalar_lea.vmem %s1528_s20, %s819_s27 }
  0x46   : > { %p820_p4 = scmp.ne.s32.totalorder %s1529_s18, 0 }
  0x48   : > { %327 = sbr.rel (%p820_p4) target bundleno = 79 (0x4f), region = 56 }
  0x4d   : > { %vm328_vm0 = vcmask 261120   ;;  %v1183_v0 = vmov 0.0  }
  0x4e   : > { %329 = vst.msk [vmem:[#allocation2] sm:$0xff] %vm328_vm0, %v1183_v0 }
  0x4f PF: > { %v1380_v1 = vld [vmem:[%s321_s9] sm:$0xff]  ;;  %v1184_v2 = vmov 0   ;;  %v370_v3 = vld [vmem:[%s1358_s2] sm:$0xf]  ;;  %vm384_vm1 = vcmask 1043456   ;;  %s1530_s10 = sld [smem:[#allocation13_spill]]  ;;  %v331_v19 = vlaneseq }
  0x50   : > { %983 = vset.pattern.permute.xlu0 %v1184_v2  ;;  %v371_v4 = vld [vmem:[%s1358_s2 + $0x4] sm:$0xf]  ;;  %v386_v5 = vsel %vm384_vm1, %v370_v3, 0  ;;  %v372_v7 = vld [vmem:[%s1358_s2 + $0x8] sm:$0xf]  ;;  %v1185_v24 = vmov 0.0  }
  0x51   : > { %337 = vperm.xlu0 %983, %v1380_v1   ;;  %v407_v6 = vsel %vm384_vm1, %v371_v4, 0  ;;  %395 = vmatpush.bf16.msra.mxu0 %v386_v5  ;;  %v428_v8 = vsel %vm384_vm1, %v372_v7, 0  ;;  %v373_v9 = vld [vmem:[%s1358_s2 + $0xc] sm:$0xf]  ;;  %v376_v11 = vld [vmem:[%s1358_s2 + $0x18] sm:$0xf] }
  0x52   : > { %416 = vmatpush.bf16.msra.mxu1 %v407_v6  ;;  %437 = vmatpush.bf16.msra.mxu2 %v428_v8  ;;  %v449_v10 = vsel %vm384_vm1, %v373_v9, 0  ;;  %v377_v12 = vld [vmem:[%s1358_s2 + $0x1c] sm:$0xf]  ;;  %v374_v13 = vld [vmem:[%s1358_s2 + $0x10] sm:$0xf]  ;;  %v512_v14 = vsel %vm384_vm1, %v376_v11, 0 }
  0x53   : > { %458 = vmatpush.bf16.msra.mxu3 %v449_v10  ;;  %v533_v15 = vsel %vm384_vm1, %v377_v12, 0  ;;  %v470_v16 = vsel %vm384_vm1, %v374_v13, 0  ;;  %v375_v17 = vld [vmem:[%s1358_s2 + $0x14] sm:$0xf]  ;;  %v332_v20 = vand.u32 127, %v331_v19  ;;  %vm345_vm3 = vcmask 1040384  }
  0x54   : > { %v491_v18 = vsel %vm384_vm1, %v375_v17, 0  ;;  %vm350_vm4 = vcmask 1041409   ;;  %vm380_vm5 = vcmask 64512   ;;  %vm354_vm6 = vcmask 1042434  }
  0x55   : > { %479 = vmatpush.bf16.msrb.mxu0 %v470_v16  ;;  %s821_s19 = sshll.u32 %s1530_s10, 3  ;;  %vm358_vm7 = vcmask 1043459   ;;  %vm564_vm8 = vcmask 1044484   ;;  %vm567_vm9 = vcmask 1045509   ;;  %vm570_vm10 = vcmask 1046534   ;;  %p835_p1 = scmp.ne.s32.totalorder %s1530_s10, 1 }
  0x56   : > { %521 = vmatpush.bf16.msrb.mxu2 %v512_v14  ;;  %500 = vmatpush.bf16.msrb.mxu1 %v491_v18  ;;  %v334_v21 = vstv %s821_s19  ;;  %vm573_vm11 = vcmask 1047559   ;;  %v548_v18 = vld [vmem:[#allocation2] sm:$0xff]  ;;  %vm577_vm12 = vcmask 261120   ;;  %s1531_s24 = sld [smem:[#allocation19_spill]] (!%p835_p1) }
  0x57   : > { %542 = vmatpush.bf16.msrb.mxu3 %v533_v15  ;;  %v335_v22 = vadd.s32 %v334_v21, %v332_v20  ;;  %s1533_s5 = sld [smem:[#allocation20_spill]] (!%p835_p1) }
  0x58   : > { %s1534_s14 = sld [smem:[#allocation22_spill]] (!%p835_p1) }
  0x5c   : > { %s1532_s17 = smov (!%p835_p1), %s1531_s24 }
  0xc3   : > { %v338_v23 = vpop.permute.xlu0 %337 }
  0xc4   : > { %vm339_vm2 = vcmp.lt.s32.totalorder %v335_v22, %v338_v23 }
  0xc5   : > { %v822_v25 = vsel %vm339_vm2, 1.0, %v1185_v24 }
  0xc6   : > { %v342_v26 = vpack.c.bf16 %v822_v25, %v822_v25 }
  0xc8   : > { %v344_v27 = vrot.slane %v342_v26, 3 }
  0xca   : > { %v348_v28 = vsel %vm345_vm3, %v342_v26, %v344_v27  ;;  %v351_v29 = vsel %vm350_vm4, %v342_v26, %v344_v27  ;;  %v355_v40 = vsel %vm354_vm6, %v342_v26, %v344_v27  ;;  %v359_v42 = vsel %vm358_vm7, %v342_v26, %v344_v27 }
  0xcb   : > { %v823_v30 = vpack.i.b16 %v348_v28, %v348_v28  ;;  %v363_v31 = vunpack.i.h.s16 %v348_v28  ;;  %v353_v32 = vrot.slane %v351_v29, 1  ;;  %v357_v43 = vrot.slane %v355_v40, 2 }
  0xcc   : > { %v361_v44 = vrot.slane %v359_v42, 3 }
  0xcd   : > { %v379_v33 = vperm.slane %v823_v30, 0  ;;  %v401_v34 = vpack.i.b16 %v363_v31, %v363_v31  ;;  %v826_v35 = vpack.i.b16 %v353_v32, %v353_v32  ;;  %v365_v36 = vunpack.i.h.s16 %v353_v32 }
  0xce   : > { %v367_v45 = vunpack.i.h.s16 %v357_v43  ;;  %v829_v46 = vpack.i.b16 %v357_v43, %v357_v43  ;;  %v369_v47 = vunpack.i.h.s16 %v361_v44  ;;  %v832_v49 = vpack.i.b16 %v361_v44, %v361_v44 }
  0xcf   : > { %824 = vmatmul.msk.bf16.vlgmr.msra.gmra.mxu0 %vm380_vm5, %v379_v33  ;;  %v402_v37 = vperm.slane %v401_v34, 0  ;;  %v423_v38 = vperm.slane %v826_v35, 0  ;;  %v443_v39 = vpack.i.b16 %v365_v36, %v365_v36 }
  0xd0   : > { %v485_v48 = vpack.i.b16 %v367_v45, %v367_v45  ;;  %v465_v50 = vperm.slane %v829_v46, 0  ;;  %v527_v51 = vpack.i.b16 %v369_v47, %v369_v47  ;;  %v507_v53 = vperm.slane %v832_v49, 0 }
  0xd1   : > { %825 = vmatmul.msk.bf16.vlgmr.msra.gmra.mxu1 %vm380_vm5, %v402_v37  ;;  %827 = vmatmul.msk.bf16.vlgmr.msra.gmra.mxu2 %vm380_vm5, %v423_v38  ;;  %v444_v41 = vperm.slane %v443_v39, 0 }
  0xd2   : > { %v486_v52 = vperm.slane %v485_v48, 0  ;;  %v528_v54 = vperm.slane %v527_v51, 0 }
  0xd3   : > { %828 = vmatmul.msk.bf16.vlgmr.msra.gmra.mxu3 %vm380_vm5, %v444_v41 }
  0xdf   : > { %830 = vmatmul.msk.bf16.vlgmr.msrb.gmra.mxu0 %vm380_vm5, %v465_v50 }
  0xe1   : > { %831 = vmatmul.msk.bf16.vlgmr.msrb.gmra.mxu1 %vm380_vm5, %v486_v52  ;;  %833 = vmatmul.msk.bf16.vlgmr.msrb.gmra.mxu2 %vm380_vm5, %v507_v53 }
  0xe3   : > { %834 = vmatmul.msk.bf16.vlgmr.msrb.gmra.mxu3 %vm380_vm5, %v528_v54 }
 0x14c   : > { %v397_v55 = vpop.f32.mrf.mxu0 }
 0x14e   : > { %v418_v56 = vpop.f32.mrf.mxu1 }
 0x14f   : > { %v557_v61 = vrot.slane %v418_v56, 7 }
 0x151   : > { %v558_v2 = vsel %vm350_vm4, %v557_v61, %v397_v55 }
 0x154   : > { %v399_v57 = vpop.f32.mrf.mxu0  ;;  %v439_v58 = vpop.f32.mrf.mxu2 }
 0x155   : > { %v559_v62 = vrot.slane %v439_v58, 6 }
 0x156   : > { %v420_v59 = vpop.f32.mrf.mxu1  ;;  %v460_v60 = vpop.f32.mrf.mxu3 }
 0x157   : > { %v561_v3 = vrot.slane %v460_v60, 5  ;;  %v560_v6 = vsel %vm354_vm6, %v559_v62, %v558_v2 }
 0x159   : > { %v562_v8 = vsel %vm358_vm7, %v561_v3, %v560_v6 }
 0x15c   : > { %v441_v63 = vpop.f32.mrf.mxu2  ;;  %v481_v0 = vpop.f32.mrf.mxu0 }
 0x15d   : > { %v563_v7 = vrot.slane %v481_v0, 4 }
 0x15e   : > { %v462_v4 = vpop.f32.mrf.mxu3  ;;  %v502_v5 = vpop.f32.mrf.mxu1 }
 0x15f   : > { %v566_v9 = vrot.slane %v502_v5, 3  ;;  %v565_v10 = vsel %vm564_vm8, %v563_v7, %v562_v8 }
 0x161   : > { %v568_v14 = vsel %vm567_vm9, %v566_v9, %v565_v10 }
 0x164   : > { %v483_v11 = vpop.f32.mrf.mxu0  ;;  %v523_v12 = vpop.f32.mrf.mxu2 }
 0x165   : > { %v569_v13 = vrot.slane %v523_v12, 2 }
 0x166   : > { %v504_v15 = vpop.f32.mrf.mxu1  ;;  %v544_v16 = vpop.f32.mrf.mxu3 }
 0x167   : > { %v571_v17 = vsel %vm570_vm10, %v569_v13, %v568_v14  ;;  %v572_v19 = vrot.slane %v544_v16, 1 }
 0x169   : > { %v574_v20 = vsel %vm573_vm11, %v572_v19, %v571_v17 }
 0x16a   : > { %v576_v21 = vadd.f32 %v574_v20, %v548_v18  ;;  %582 = sbr.rel (%p835_p1) target bundleno = 780 (0x30c), region = 60 }
 0x16c   : > { %578 = vst.msk [vmem:[#allocation2] sm:$0xff] %vm577_vm12, %v576_v21  ;;  %v525_v22 = vpop.f32.mrf.mxu2 }
 0x16e   : > { %v546_v23 = vpop.f32.mrf.mxu3 }
 0x16f   : > { %vm583_vm13 = vcmp.lt.s32.totalorder %v1380_v1, 16  ;;  %v860_v24 = vld [vmem:[%s1531_s24 + $0x8] sm:$0xff]  ;;  %v1186_v25 = vmov 0   ;;  %v862_v43 = vld [vmem:[#allocation6 + $0x8] sm:$0xff]  ;;  %v985_v45 = vld [vmem:[%s1533_s5] ss:$0 sm:$0xff] }
 0x170   : > { %984 = vset.pattern.permute.xlu0 %v1186_v25  ;;  %v584_v26 = vsel %vm583_vm13, %v1380_v1, 16  ;;  %639 = vmatpush.bf16.msra.mxu0 %v860_v24  ;;  %v859_v1 = vld [vmem:[%s1532_s17] sm:$0xff]  ;;  %v861_v44 = vld [vmem:[#allocation6] sm:$0xff] }
 0x171   : > { %vm585_vm14 = vcmp.gt.s32.totalorder %v584_v26, 1  ;;  %677 = vmatpush.bf16.msra.mxu1 %v862_v43  ;;  %v986_v51 = vld [vmem:[%s1534_s14] ss:$0 sm:$0xff] }
 0x172   : > { %v586_v27 = vsel %vm585_vm14, %v584_v26, 1 }
 0x173   : > { %v587_v28 = vcvt.s32.f32 %v586_v27  ;;  %v588_v39 = vld [vmem:[#allocation2] sm:$0xff] }
 0x174   : > { %640 = vmatpush.bf16.msra.mxu0 %v859_v1 }
 0x175   : > { %987 = vrcp.f32 %v587_v28  ;;  %v600_v31 = vand.u32 2147483648, %v587_v28  ;;  %vm594_vm15 = vweird.f32 %v587_v28  ;;  %v598_v33 = vand.u32 2147483647, %v587_v28  ;;  %678 = vmatpush.bf16.msra.mxu1 %v861_v44 }
 0x177   : > { %v601_v35 = vor.u32 1.1754944e-38, %v600_v31  ;;  %vm599_vm2 = vcmp.eq.f32.partialorder %v598_v33, 8.507059e+37 }
 0x17b   : > { %v988_v29 = vpop.eup %987 }
 0x17c   : > { %v590_v30 = vmul.f32 %v988_v29, %v587_v28  ;;  %vm595_vm0 = vweird.f32 %v988_v29 }
 0x17d   : > { %vm596_vm1 = vmor %vm594_vm15, %vm595_vm0 }
 0x17e   : > { %v591_v32 = vsub.f32 1.0, %v590_v30 }
 0x180   : > { %v592_v34 = vmul.f32 %v988_v29, %v591_v32 }
 0x182   : > { %v593_v36 = vadd.f32 %v988_v29, %v592_v34 }
 0x184   : > { %v597_v37 = vsel %vm596_vm1, %v988_v29, %v593_v36 }
 0x185   : > { %v602_v38 = vsel %vm599_vm2, %v601_v35, %v597_v37 }
 0x186   : > { %605 = vperm.xlu0 %984, %v602_v38  }
 0x1f8   : > { %v606_v40 = vpop.permute.xlu0 %605 }
 0x1f9   : > { %v608_v41 = vmul.f32 %v606_v40, %v588_v39 }
 0x1fb   : > { %v609_v42 = vpack.c.bf16 %v608_v41, %v608_v41 }
 0x1fd   : > { %844 = vmatmul.msk.bf16.vlgmr.msra.gmra.mxu0 %vm577_vm12, %v609_v42 }
 0x27a   : > { %v642_v46 = vpop.f32.mrf.mxu0 }
 0x27b   : > { %v643_v47 = vadd.f32 %v985_v45, %v642_v46 }
 0x27d   : > { %989 = vtanh.f32 %v643_v47 }
 0x282   : > { %v644_v48 = vpop.f32.mrf.mxu0 }
 0x283   : > { %v990_v49 = vpop.eup %989 }
 0x284   : > { %v647_v50 = vpack.c.bf16 %v990_v49, %v990_v49 }
 0x286   : > { %853 = vmatmul.msk.bf16.vlgmr.msra.gmra.mxu1 %vm577_vm12, %v647_v50 }
 0x303   : > { %v680_v52 = vpop.f32.mrf.mxu1 }
 0x304   : > { %v681_v53 = vadd.f32 %v986_v51, %v680_v52 }
 0x306   : > { %684 = vst [vmem:[%s317_s15] sm:$0xff] %v681_v53 }
 0x30b   : > { %v682_v54 = vpop.f32.mrf.mxu1 }
 0x30c PF: > { %s855_s9 = sshll.u32 %s1165_s28, 3  ;;  %s1536_s19 = sld [smem:[#allocation23_spill]] }
 0x30d   : > { %s698_s4 = sshll.u32 %s317_s15, 4  ;;  %s686_s6 = scalar_lea.sflag [#allocation5], %s315_s0  ;;  %s699_s4 = int_to_ptr.vmem [resolvable:$true] %s698_s4 }
 0x312   : > { %s696_s16 = scalar_lea.hbm %s1536_s19, %s855_s9  ;;  %s1071_s5 = scalar_lea.hbm %s1536_s19, 16 }
 0x313   : > { %s700_s24 = sshll.u32 %s696_s16, 4  ;;  %s701_s24 = int_to_ptr.hbm [resolvable:$true] %s700_s24 }
 0x314   : > { %s1065_s12 = sshra.s32 %s701_s24, 4  ;;  %s1066_s12 = int_to_ptr.hbm [resolvable:$true] %s1065_s12 }
 0x315   : > { %s1067_s13 = scalar_lea.hbm %s1066_s12, 8  ;;  %p1072_p5 = scmp.lt.s32.totalorder %s1066_s12, %s1536_s19 }
 0x316   : > { %p1068_p0 = scmp.ne.s32.totalorder %s1066_s12, %s1067_s13  ;;  %p1073_p7 = scmp.lt.s32.totalorder %s1071_s5, %s1067_s13 }
 0x318   : > { %p1069_p2 = pnand %p1068_p0, %p1292_p6  ;;  %p1074_p8 = por %p1073_p7, %p1072_p5 }
 0x31a   : > { %p1070_p3 = pneg %p1069_p2 }
 0x31c   : > { %p1075_p9 = pnand %p1074_p8, %p1070_p3 }
 0x31e   : > { %1078 = shalt.err (!%p1075_p9)
}
 0x31f   : > { %869 = dma.vmem_to_hbm [thread:$0]  (%p1292_p6), %s699_s4, 128, %s701_s24, %s686_s6  }
 0x320 PF: > { %s1537_s0 = sld [smem:[#allocation12_spill]]  ;;  %p886_p12 = scmp.ge.s32.totalorder %s1177_s7, 2 }
 0x322   : > { %p880_p13 = pnand %p886_p12, %p1298_p10 }
 0x324   : > { %p881_p11 = pneg %p880_p13 }
 0x326   : > { %s712_s15 = sand.u32 1, %s1537_s0  }
 0x327   : > { %s713_s14 = scalar_lea.sflag [#allocation5], %s712_s15 }
 0x328   : > { %1132 = dma.done.wait (%p881_p11), %s713_s14, 128  }
 0x329   : > { %1134 = vsyncadd (%p881_p11), %s713_s14, 4294967168  ;;  %s23_s7 = sadd.s32 1, %s1177_s7   ;;  %s1539_s20 = smov %s1343_s21 }
 0x32a   : > { %p20_p4 = scmp.ge.s32.totalorder %s23_s7, 6   ;;  %s1540_s9 = sld [smem:[#allocation16_spill]] }
 0x32b   : > { %s1541_s18 = sld [smem:[#allocation17_spill]]  ;;  %s1542_s21 = smov %s1141_s22 }
 0x32c   : > { %s1543_s22 = smov %s1145_s23  ;;  %s1544_s23 = smov %s1340_s8 }
 0x32d   : > { %s1545_s24 = smov %s1153_s25  ;;  %s1546_s25 = smov %s1157_s26 }
 0x32e   : > { %s1547_s26 = smov %s1539_s20  ;;  %s1548_s27 = smov %s1169_s29 }
 0x32f   : > { %s1549_s28 = smov %s1173_s30  ;;  %22 = sbr.rel (!%p20_p4) target bundleno = 17 (0x11), region = 104 }
 0x330   : > { %s1550_s29 = smov %s1540_s9 }
 0x331   : > { %s1551_s30 = smov %s1541_s18 }
 0x334   :  { %719 = vsyncpa [#allocation4], 1 }
 0x335   :  { %721 = vsyncpa [#allocation4 + $0x1], 1 }
 0x336   :  { %722 = vsyncpa [#allocation7], 1 }
 0x337   :  { %723 = vsyncpa [#allocation5], 1 }
 0x338   :  { %725 = vsyncpa [#allocation5 + $0x1], 1 }

// kernel: tpu_custom_call.1
= control target key start
LH: loop header
LB: loop body
LE: loop exit
PB: predicated region body
PF: predicated region fallthrough
CT: control target
= control target key end

     0   :  { %s1489_s0 = inlined_call_operand.vmem [shape: s32[16,1], index: 0, kind: input, shape index: {}]   ;;  %s1490_s1 = inlined_call_operand.hbm [shape: bf16[16,16,32], index: 1, kind: input, shape index: {}]   ;;  %s1491_s2 = inlined_call_operand.vmem [shape: bf16[32,32], index: 2, kind: input, shape index: {}]   ;;  %s1492_s3 = inlined_call_operand.vmem [shape: f32[1,32], index: 3, kind: input, shape index: {}]   ;;  %s1493_s4 = inlined_call_operand.hbm [shape: bf16[32,128], index: 4, kind: input, shape index: {}]   ;;  %s1494_s5 = inlined_call_operand.vmem [shape: f32[1,128], index: 5, kind: input, shape index: {}]   ;;  %s1495_s6 = inlined_call_operand.hbm [shape: f32[16,128], index: 6, kind: output, shape index: {}]  }
   0x1   :  { %1507 = sst [smem:[#allocation18_spill]] %s1489_s0 }
   0x2   :  { %1508 = sst [smem:[#allocation19_spill]] %s1491_s2 }
   0x3   :  { %1509 = sst [smem:[#allocation20_spill]] %s1492_s3 }
   0x4   :  { %1510 = sst [smem:[#allocation21_spill]] %s1493_s4 }
   0x5   :  { %1511 = sst [smem:[#allocation22_spill]] %s1494_s5 }
   0x6   :  { %1512 = sst [smem:[#allocation23_spill]] %s1495_s6 }
   0x7   :  { %11 = vsyncpa [#allocation4], 0 }
   0x8   :  { %13 = vsyncpa [#allocation4 + $0x1], 0 }
   0x9   :  { %14 = vsyncpa [#allocation7], 0 }
   0xa   :  { %15 = vsyncpa [#allocation5], 0 }
   0xb   :  { %17 = vsyncpa [#allocation5 + $0x1], 0  ;;  %s1222_s21 = smov 0   ;;  %s1224_s22 = smov 0  }
   0xc   :  { %s1226_s23 = smov 0   ;;  %s1228_s24 = smov 0  }
   0xd   :  { %s1230_s25 = smov 0   ;;  %s1232_s26 = smov 0  }
   0xe   :  { %s1234_s27 = smov 0   ;;  %s1236_s28 = smov 0  }
   0xf   :  { %s1238_s29 = smov 0   ;;  %s1240_s30 = smov 0  }
  0x10   :  { %s1242_s7 = smov 0  }
  0x11 LB: > { %1513 = sst [smem:[#allocation12_spill]] %s1137_s21  ;;  %s806_s8 = sadd.s32 4294967295, %s1177_s7   ;;  %s1177_s7 = sphi %s1242_s7, %s23_s7   ;;  %s1173_s30 = sphi %s1240_s30, %s1551_s30   ;;  %s1169_s29 = sphi %s1238_s29, %s1550_s29   ;;  %s1165_s28 = sphi %s1236_s28, %s1549_s28   ;;  %s1161_s27 = sphi %s1234_s27, %s1548_s27   ;;  %s1157_s26 = sphi %s1232_s26, %s1547_s26   ;;  %s1153_s25 = sphi %s1230_s25, %s1546_s25   ;;  %s1149_s24 = sphi %s1228_s24, %s1545_s24   ;;  %s1145_s23 = sphi %s1226_s23, %s1544_s23   ;;  %s1141_s22 = sphi %s1224_s22, %s1543_s22   ;;  %s1137_s21 = sphi %s1222_s21, %s1542_s21  }
  0x12   : > { %1514 = sst [smem:[#allocation13_spill]] %s1161_s27  ;;  %s807_s9 = sadd.s32 4294967294, %s1177_s7  }
  0x13   : > { %p83_p0 = scmp.ne.s32.totalorder %s1153_s25, %s1149_s24  ;;  %p1278_p1 = scmp.eq.s32.totalorder %s806_s8, 0 }
  0x14   : > { %p190_p2 = scmp.ne.s32.totalorder %s1145_s23, %s1141_s22  ;;  %p191_p3 = scmp.eq.s32.totalorder %s806_s8, 3 }
  0x15   : > { %p1286_p4 = por %p1278_p1, %p83_p0  ;;  %p196_p5 = scmp.ne.s32.totalorder %s1141_s22, %s1137_s21 }
  0x16   : > { %p1292_p6 = por %p191_p3, %p190_p2  ;;  %p197_p7 = scmp.eq.s32.totalorder %s807_s9, 3 }
  0x17   : > { %p808_p8 = scmp.ge.s32.totalorder %s1177_s7, 1  ;;  %p204_p9 = scmp.lt.s32.totalorder %s1177_s7, 5 }
  0x18   : > { %s1517_s12 = scalar_select %p1292_p6, 1, 0 }
  0x19   : > { %p1298_p10 = por %p197_p7, %p196_p5  ;;  %p1302_p11 = pnand %p808_p8, %p204_p9 }
  0x1a   : > { %1518 = sst [smem:[#allocation14_spill]] %s1517_s12  ;;  %s1179_s18 = smov [#allocation6]  }
  0x1b   : > { %s1519_s13 = scalar_select %p1298_p10, 1, 0 }
  0x1c   : > { %s1522_s4 = sld [smem:[#allocation21_spill]]  ;;  %p871_p12 = pneg %p1302_p11 }
  0x1d   : > { %1520 = sst [smem:[#allocation15_spill]] %s1519_s13  ;;  %s223_s19 = sshll.u32 %s1179_s18, 4  ;;  %s224_s19 = int_to_ptr.vmem [resolvable:$true] %s223_s19 }
  0x1e   : > { %p872_p13 = pnand %p871_p12, %p1278_p1  ;;  %s1496_s20 = smov 64  }
  0x1f   : > { %s1497_s24 = smov 4   ;;  %s32_s8 = sadd.s32 1, %s1169_s29 }
  0x20   : > { %s35_s9 = sadd.s32 1, %s1173_s30  ;;  %p33_p0 = scmp.ge.s32.totalorder %s32_s8, 2 }
  0x21   : > { %s70_s15 = sadd.s32 1, %s1157_s26  ;;  %p77_p2 = scmp.ne.s32.totalorder %s1157_s26, %s1153_s25 }
  0x22   : > { %s221_s17 = sshll.u32 %s1522_s4, 4  ;;  %p78_p3 = scmp.eq.s32.totalorder %s1177_s7, 0  ;;  %s222_s17 = int_to_ptr.hbm [resolvable:$true] %s221_s17 }
  0x23   : > { %874 = dma.hbm_to_vmem [thread:$0]  (!%p872_p13), %s222_s17, 256, %s224_s19, [#allocation7], %s1496_s20, %s1496_s20, %s1497_s24  }
  0x24   : > { %s1553_s8 = smov (%p33_p0, %s32_s8), 0  ;;  %s1555_s9 = smov (!%p33_p0, %s35_s9), %s1173_s30 }
  0x25   : > { %1523 = sst [smem:[#allocation16_spill]] %s1553_s8  ;;  %s66_s16 = ssub.s32 %s1169_s29, %s1553_s8 }
  0x26   : > { %p1327_p5 = por %p78_p3, %p77_p2  ;;  %p37_p7 = scmp.ge.s32.totalorder %s1555_s9, 2 }
  0x27   : > { %s180_s17 = sadd.s32 1, %s1145_s23  ;;  %p884_p8 = scmp.lt.s32.totalorder %s1177_s7, 4 }
  0x28   : > { %s247_s19 = sand.u32 1, %s1157_s26   ;;  %s1557_s9 = smov (%p37_p7, %s1555_s9), 0 }
  0x29   : > { %1525 = sst [smem:[#allocation17_spill]] %s1557_s9  ;;  %s811_s20 = sshll.u32 %s247_s19, 5 }
  0x2a   : > { %s65_s24 = ssub.s32 %s1173_s30, %s1557_s9  ;;  %s858_s13 = sshll.u32 %s1173_s30, 4 }
  0x2b   : > { %s67_s4 = sor.u32 %s66_s16, %s65_s24  ;;  %p178_p9 = scmp.eq.s32.totalorder %s65_s24, 0 }
  0x2c   : > { %p68_p12 = scmp.eq.s32.totalorder %s67_s4, 0  ;;  %s256_s6 = sadd.s32 %s1169_s29, %s858_s13 }
  0x2d   : > { %s1340_s8 = scalar_select %p178_p9, %s1145_s23, %s180_s17  }
  0x2e   : > { %s1343_s21 = scalar_select %p68_p12, %s1157_s26, %s70_s15  }
  0x2f   : > { %s251_s12 = scalar_lea.vmem [#allocation3], %s811_s20  ;;  %s814_s3 = sshll.u32 %s256_s6, 2 }
  0x30   : > { %s261_s5 = sshll.u32 %s251_s12, 4  ;;  %s258_s0 = scalar_lea.hbm %s1490_s1, %s814_s3  ;;  %s262_s5 = int_to_ptr.vmem [resolvable:$true] %s261_s5 }
  0x31   : > { %p876_p13 = pnand %p884_p8, %p1327_p5  ;;  %s259_s16 = sshll.u32 %s258_s0, 4  ;;  %s260_s16 = int_to_ptr.hbm [resolvable:$true] %s259_s16 }
  0x32   : > { %s248_s4 = scalar_lea.sflag [#allocation4], %s247_s19  ;;  %s1182_s24 = smov 128  }
  0x33   : > { %s1526_s17 = smov 4   ;;  %s1527_s9 = smov 64  }
  0x34   : > { %878 = dma.hbm_to_vmem [thread:$0]  (!%p876_p13), %s260_s16, 512, %s262_s5, %s248_s4, %s1182_s24, %s1527_s9, %s1526_s17  }
  0x35   : > { %273 = sbr.rel (%p1302_p11) target bundleno = 800 (0x320), region = 44  ;;  %s275_s6 = sand.u32 (!%p1302_p11), 1, %s1153_s25  }
  0x36   : > { %s816_s12 = sshll.u32 (!%p1302_p11), %s275_s6, 5  ;;  %s276_s13 = scalar_lea.sflag (!%p1302_p11), [#allocation4], %s275_s6 }
  0x37   : > { %s1358_s2 = scalar_lea.vmem (!%p1302_p11), [#allocation3], %s816_s12 }
  0x3a   : > { %1124 = dma.done.wait (%p1286_p4), %s276_s13, 512  }
  0x3b   : > { %1126 = vsyncadd (%p1286_p4), %s276_s13, 4294966784 }
  0x3c   : > { %1128 = dma.done.wait (%p1278_p1), [#allocation7], 256  }
  0x3d   : > { %1130 = vsyncadd (%p1278_p1), [#allocation7], 4294967040  ;;  %s315_s0 = sand.u32 1, %s1141_s22   ;;  %p318_p11 = scmp.lt.s32.totalorder %s1165_s28, 1 }
  0x3e   : > { %s1372_s3 = sshll.u32 %s315_s0, 3  ;;  %s1528_s20 = sld [smem:[#allocation18_spill]] }
  0x3f   : > { %s319_s5 = scalar_select %p318_p11, %s1165_s28, 1 }
  0x40   : > { %s317_s15 = scalar_lea.vmem [#allocation8], %s1372_s3  ;;  %s1529_s18 = sld [smem:[#allocation13_spill]] }
  0x41   : > { %s819_s27 = sshll.u32 %s319_s5, 3 }
  0x44   : > { %s321_s9 = scalar_lea.vmem %s1528_s20, %s819_s27 }
  0x46   : > { %p820_p4 = scmp.ne.s32.totalorder %s1529_s18, 0 }
  0x48   : > { %327 = sbr.rel (%p820_p4) target bundleno = 79 (0x4f), region = 56 }
  0x4d   : > { %vm328_vm0 = vcmask 261120   ;;  %v1183_v0 = vmov 0.0  }
  0x4e   : > { %329 = vst.msk [vmem:[#allocation2] sm:$0xff] %vm328_vm0, %v1183_v0 }
  0x4f PF: > { %v1380_v1 = vld [vmem:[%s321_s9] sm:$0xff]  ;;  %v1184_v2 = vmov 0   ;;  %v370_v3 = vld [vmem:[%s1358_s2] sm:$0xf]  ;;  %vm384_vm1 = vcmask 1043456   ;;  %s1530_s10 = sld [smem:[#allocation13_spill]]  ;;  %v331_v19 = vlaneseq }
  0x50   : > { %983 = vset.pattern.permute.xlu0 %v1184_v2  ;;  %v371_v4 = vld [vmem:[%s1358_s2 + $0x4] sm:$0xf]  ;;  %v386_v5 = vsel %vm384_vm1, %v370_v3, 0  ;;  %v372_v7 = vld [vmem:[%s1358_s2 + $0x8] sm:$0xf]  ;;  %v1185_v24 = vmov 0.0  }
  0x51   : > { %337 = vperm.xlu0 %983, %v1380_v1   ;;  %v407_v6 = vsel %vm384_vm1, %v371_v4, 0  ;;  %395 = vmatpush.bf16.msra.mxu0 %v386_v5  ;;  %v428_v8 = vsel %vm384_vm1, %v372_v7, 0  ;;  %v373_v9 = vld [vmem:[%s1358_s2 + $0xc] sm:$0xf]  ;;  %v376_v11 = vld [vmem:[%s1358_s2 + $0x18] sm:$0xf] }
  0x52   : > { %416 = vmatpush.bf16.msra.mxu1 %v407_v6  ;;  %437 = vmatpush.bf16.msra.mxu2 %v428_v8  ;;  %v449_v10 = vsel %vm384_vm1, %v373_v9, 0  ;;  %v377_v12 = vld [vmem:[%s1358_s2 + $0x1c] sm:$0xf]  ;;  %v374_v13 = vld [vmem:[%s1358_s2 + $0x10] sm:$0xf]  ;;  %v512_v14 = vsel %vm384_vm1, %v376_v11, 0 }
  0x53   : > { %458 = vmatpush.bf16.msra.mxu3 %v449_v10  ;;  %v533_v15 = vsel %vm384_vm1, %v377_v12, 0  ;;  %v470_v16 = vsel %vm384_vm1, %v374_v13, 0  ;;  %v375_v17 = vld [vmem:[%s1358_s2 + $0x14] sm:$0xf]  ;;  %v332_v20 = vand.u32 127, %v331_v19  ;;  %vm345_vm3 = vcmask 1040384  }
  0x54   : > { %v491_v18 = vsel %vm384_vm1, %v375_v17, 0  ;;  %vm350_vm4 = vcmask 1041409   ;;  %vm380_vm5 = vcmask 64512   ;;  %vm354_vm6 = vcmask 1042434  }
  0x55   : > { %479 = vmatpush.bf16.msrb.mxu0 %v470_v16  ;;  %s821_s19 = sshll.u32 %s1530_s10, 3  ;;  %vm358_vm7 = vcmask 1043459   ;;  %vm564_vm8 = vcmask 1044484   ;;  %vm567_vm9 = vcmask 1045509   ;;  %vm570_vm10 = vcmask 1046534   ;;  %p835_p1 = scmp.ne.s32.totalorder %s1530_s10, 1 }
  0x56   : > { %521 = vmatpush.bf16.msrb.mxu2 %v512_v14  ;;  %500 = vmatpush.bf16.msrb.mxu1 %v491_v18  ;;  %v334_v21 = vstv %s821_s19  ;;  %vm573_vm11 = vcmask 1047559   ;;  %v548_v18 = vld [vmem:[#allocation2] sm:$0xff]  ;;  %vm577_vm12 = vcmask 261120   ;;  %s1531_s24 = sld [smem:[#allocation19_spill]] (!%p835_p1) }
  0x57   : > { %542 = vmatpush.bf16.msrb.mxu3 %v533_v15  ;;  %v335_v22 = vadd.s32 %v334_v21, %v332_v20  ;;  %s1533_s5 = sld [smem:[#allocation20_spill]] (!%p835_p1) }
  0x58   : > { %s1534_s14 = sld [smem:[#allocation22_spill]] (!%p835_p1) }
  0x5c   : > { %s1532_s17 = smov (!%p835_p1), %s1531_s24 }
  0xc3   : > { %v338_v23 = vpop.permute.xlu0 %337 }
  0xc4   : > { %vm339_vm2 = vcmp.lt.s32.totalorder %v335_v22, %v338_v23 }
  0xc5   : > { %v822_v25 = vsel %vm339_vm2, 1.0, %v1185_v24 }
  0xc6   : > { %v342_v26 = vpack.c.bf16 %v822_v25, %v822_v25 }
  0xc8   : > { %v344_v27 = vrot.slane %v342_v26, 3 }
  0xca   : > { %v348_v28 = vsel %vm345_vm3, %v342_v26, %v344_v27  ;;  %v351_v29 = vsel %vm350_vm4, %v342_v26, %v344_v27  ;;  %v355_v40 = vsel %vm354_vm6, %v342_v26, %v344_v27  ;;  %v359_v42 = vsel %vm358_vm7, %v342_v26, %v344_v27 }
  0xcb   : > { %v823_v30 = vpack.i.b16 %v348_v28, %v348_v28  ;;  %v363_v31 = vunpack.i.h.s16 %v348_v28  ;;  %v353_v32 = vrot.slane %v351_v29, 1  ;;  %v357_v43 = vrot.slane %v355_v40, 2 }
  0xcc   : > { %v361_v44 = vrot.slane %v359_v42, 3 }
  0xcd   : > { %v379_v33 = vperm.slane %v823_v30, 0  ;;  %v401_v34 = vpack.i.b16 %v363_v31, %v363_v31  ;;  %v826_v35 = vpack.i.b16 %v353_v32, %v353_v32  ;;  %v365_v36 = vunpack.i.h.s16 %v353_v32 }
  0xce   : > { %v367_v45 = vunpack.i.h.s16 %v357_v43  ;;  %v829_v46 = vpack.i.b16 %v357_v43, %v357_v43  ;;  %v369_v47 = vunpack.i.h.s16 %v361_v44  ;;  %v832_v49 = vpack.i.b16 %v361_v44, %v361_v44 }
  0xcf   : > { %824 = vmatmul.msk.bf16.vlgmr.msra.gmra.mxu0 %vm380_vm5, %v379_v33  ;;  %v402_v37 = vperm.slane %v401_v34, 0  ;;  %v423_v38 = vperm.slane %v826_v35, 0  ;;  %v443_v39 = vpack.i.b16 %v365_v36, %v365_v36 }
  0xd0   : > { %v485_v48 = vpack.i.b16 %v367_v45, %v367_v45  ;;  %v465_v50 = vperm.slane %v829_v46, 0  ;;  %v527_v51 = vpack.i.b16 %v369_v47, %v369_v47  ;;  %v507_v53 = vperm.slane %v832_v49, 0 }
  0xd1   : > { %825 = vmatmul.msk.bf16.vlgmr.msra.gmra.mxu1 %vm380_vm5, %v402_v37  ;;  %827 = vmatmul.msk.bf16.vlgmr.msra.gmra.mxu2 %vm380_vm5, %v423_v38  ;;  %v444_v41 = vperm.slane %v443_v39, 0 }
  0xd2   : > { %v486_v52 = vperm.slane %v485_v48, 0  ;;  %v528_v54 = vperm.slane %v527_v51, 0 }
  0xd3   : > { %828 = vmatmul.msk.bf16.vlgmr.msra.gmra.mxu3 %vm380_vm5, %v444_v41 }
  0xdf   : > { %830 = vmatmul.msk.bf16.vlgmr.msrb.gmra.mxu0 %vm380_vm5, %v465_v50 }
  0xe1   : > { %831 = vmatmul.msk.bf16.vlgmr.msrb.gmra.mxu1 %vm380_vm5, %v486_v52  ;;  %833 = vmatmul.msk.bf16.vlgmr.msrb.gmra.mxu2 %vm380_vm5, %v507_v53 }
  0xe3   : > { %834 = vmatmul.msk.bf16.vlgmr.msrb.gmra.mxu3 %vm380_vm5, %v528_v54 }
 0x14c   : > { %v397_v55 = vpop.f32.mrf.mxu0 }
 0x14e   : > { %v418_v56 = vpop.f32.mrf.mxu1 }
 0x14f   : > { %v557_v61 = vrot.slane %v418_v56, 7 }
 0x151   : > { %v558_v2 = vsel %vm350_vm4, %v557_v61, %v397_v55 }
 0x154   : > { %v399_v57 = vpop.f32.mrf.mxu0  ;;  %v439_v58 = vpop.f32.mrf.mxu2 }
 0x155   : > { %v559_v62 = vrot.slane %v439_v58, 6 }
 0x156   : > { %v420_v59 = vpop.f32.mrf.mxu1  ;;  %v460_v60 = vpop.f32.mrf.mxu3 }
 0x157   : > { %v561_v3 = vrot.slane %v460_v60, 5  ;;  %v560_v6 = vsel %vm354_vm6, %v559_v62, %v558_v2 }
 0x159   : > { %v562_v8 = vsel %vm358_vm7, %v561_v3, %v560_v6 }
 0x15c   : > { %v441_v63 = vpop.f32.mrf.mxu2  ;;  %v481_v0 = vpop.f32.mrf.mxu0 }
 0x15d   : > { %v563_v7 = vrot.slane %v481_v0, 4 }
 0x15e   : > { %v462_v4 = vpop.f32.mrf.mxu3  ;;  %v502_v5 = vpop.f32.mrf.mxu1 }
 0x15f   : > { %v566_v9 = vrot.slane %v502_v5, 3  ;;  %v565_v10 = vsel %vm564_vm8, %v563_v7, %v562_v8 }
 0x161   : > { %v568_v14 = vsel %vm567_vm9, %v566_v9, %v565_v10 }
 0x164   : > { %v483_v11 = vpop.f32.mrf.mxu0  ;;  %v523_v12 = vpop.f32.mrf.mxu2 }
 0x165   : > { %v569_v13 = vrot.slane %v523_v12, 2 }
 0x166   : > { %v504_v15 = vpop.f32.mrf.mxu1  ;;  %v544_v16 = vpop.f32.mrf.mxu3 }
 0x167   : > { %v571_v17 = vsel %vm570_vm10, %v569_v13, %v568_v14  ;;  %v572_v19 = vrot.slane %v544_v16, 1 }
 0x169   : > { %v574_v20 = vsel %vm573_vm11, %v572_v19, %v571_v17 }
 0x16a   : > { %v576_v21 = vadd.f32 %v574_v20, %v548_v18  ;;  %582 = sbr.rel (%p835_p1) target bundleno = 780 (0x30c), region = 60 }
 0x16c   : > { %578 = vst.msk [vmem:[#allocation2] sm:$0xff] %vm577_vm12, %v576_v21  ;;  %v525_v22 = vpop.f32.mrf.mxu2 }
 0x16e   : > { %v546_v23 = vpop.f32.mrf.mxu3 }
 0x16f   : > { %vm583_vm13 = vcmp.lt.s32.totalorder %v1380_v1, 16  ;;  %v860_v24 = vld [vmem:[%s1531_s24 + $0x8] sm:$0xff]  ;;  %v1186_v25 = vmov 0   ;;  %v862_v43 = vld [vmem:[#allocation6 + $0x8] sm:$0xff]  ;;  %v985_v45 = vld [vmem:[%s1533_s5] ss:$0 sm:$0xff] }
 0x170   : > { %984 = vset.pattern.permute.xlu0 %v1186_v25  ;;  %v584_v26 = vsel %vm583_vm13, %v1380_v1, 16  ;;  %639 = vmatpush.bf16.msra.mxu0 %v860_v24  ;;  %v859_v1 = vld [vmem:[%s1532_s17] sm:$0xff]  ;;  %v861_v44 = vld [vmem:[#allocation6] sm:$0xff] }
 0x171   : > { %vm585_vm14 = vcmp.gt.s32.totalorder %v584_v26, 1  ;;  %677 = vmatpush.bf16.msra.mxu1 %v862_v43  ;;  %v986_v51 = vld [vmem:[%s1534_s14] ss:$0 sm:$0xff] }
 0x172   : > { %v586_v27 = vsel %vm585_vm14, %v584_v26, 1 }
 0x173   : > { %v587_v28 = vcvt.s32.f32 %v586_v27  ;;  %v588_v39 = vld [vmem:[#allocation2] sm:$0xff] }
 0x174   : > { %640 = vmatpush.bf16.msra.mxu0 %v859_v1 }
 0x175   : > { %987 = vrcp.f32 %v587_v28  ;;  %v600_v31 = vand.u32 2147483648, %v587_v28  ;;  %vm594_vm15 = vweird.f32 %v587_v28  ;;  %v598_v33 = vand.u32 2147483647, %v587_v28  ;;  %678 = vmatpush.bf16.msra.mxu1 %v861_v44 }
 0x177   : > { %v601_v35 = vor.u32 1.1754944e-38, %v600_v31  ;;  %vm599_vm2 = vcmp.eq.f32.partialorder %v598_v33, 8.507059e+37 }
 0x17b   : > { %v988_v29 = vpop.eup %987 }
 0x17c   : > { %v590_v30 = vmul.f32 %v988_v29, %v587_v28  ;;  %vm595_vm0 = vweird.f32 %v988_v29 }
 0x17d   : > { %vm596_vm1 = vmor %vm594_vm15, %vm595_vm0 }
 0x17e   : > { %v591_v32 = vsub.f32 1.0, %v590_v30 }
 0x180   : > { %v592_v34 = vmul.f32 %v988_v29, %v591_v32 }
 0x182   : > { %v593_v36 = vadd.f32 %v988_v29, %v592_v34 }
 0x184   : > { %v597_v37 = vsel %vm596_vm1, %v988_v29, %v593_v36 }
 0x185   : > { %v602_v38 = vsel %vm599_vm2, %v601_v35, %v597_v37 }
 0x186   : > { %605 = vperm.xlu0 %984, %v602_v38  }
 0x1f8   : > { %v606_v40 = vpop.permute.xlu0 %605 }
 0x1f9   : > { %v608_v41 = vmul.f32 %v606_v40, %v588_v39 }
 0x1fb   : > { %v609_v42 = vpack.c.bf16 %v608_v41, %v608_v41 }
 0x1fd   : > { %844 = vmatmul.msk.bf16.vlgmr.msra.gmra.mxu0 %vm577_vm12, %v609_v42 }
 0x27a   : > { %v642_v46 = vpop.f32.mrf.mxu0 }
 0x27b   : > { %v643_v47 = vadd.f32 %v985_v45, %v642_v46 }
 0x27d   : > { %989 = vtanh.f32 %v643_v47 }
 0x282   : > { %v644_v48 = vpop.f32.mrf.mxu0 }
 0x283   : > { %v990_v49 = vpop.eup %989 }
 0x284   : > { %v647_v50 = vpack.c.bf16 %v990_v49, %v990_v49 }
 0x286   : > { %853 = vmatmul.msk.bf16.vlgmr.msra.gmra.mxu1 %vm577_vm12, %v647_v50 }
 0x303   : > { %v680_v52 = vpop.f32.mrf.mxu1 }
 0x304   : > { %v681_v53 = vadd.f32 %v986_v51, %v680_v52 }
 0x306   : > { %684 = vst [vmem:[%s317_s15] sm:$0xff] %v681_v53 }
 0x30b   : > { %v682_v54 = vpop.f32.mrf.mxu1 }
 0x30c PF: > { %s855_s9 = sshll.u32 %s1165_s28, 3  ;;  %s1536_s19 = sld [smem:[#allocation23_spill]] }
 0x30d   : > { %s698_s4 = sshll.u32 %s317_s15, 4  ;;  %s686_s6 = scalar_lea.sflag [#allocation5], %s315_s0  ;;  %s699_s4 = int_to_ptr.vmem [resolvable:$true] %s698_s4 }
 0x312   : > { %s696_s16 = scalar_lea.hbm %s1536_s19, %s855_s9  ;;  %s1071_s5 = scalar_lea.hbm %s1536_s19, 16 }
 0x313   : > { %s700_s24 = sshll.u32 %s696_s16, 4  ;;  %s701_s24 = int_to_ptr.hbm [resolvable:$true] %s700_s24 }
 0x314   : > { %s1065_s12 = sshra.s32 %s701_s24, 4  ;;  %s1066_s12 = int_to_ptr.hbm [resolvable:$true] %s1065_s12 }
 0x315   : > { %s1067_s13 = scalar_lea.hbm %s1066_s12, 8  ;;  %p1072_p5 = scmp.lt.s32.totalorder %s1066_s12, %s1536_s19 }
 0x316   : > { %p1068_p0 = scmp.ne.s32.totalorder %s1066_s12, %s1067_s13  ;;  %p1073_p7 = scmp.lt.s32.totalorder %s1071_s5, %s1067_s13 }
 0x318   : > { %p1069_p2 = pnand %p1068_p0, %p1292_p6  ;;  %p1074_p8 = por %p1073_p7, %p1072_p5 }
 0x31a   : > { %p1070_p3 = pneg %p1069_p2 }
 0x31c   : > { %p1075_p9 = pnand %p1074_p8, %p1070_p3 }
 0x31e   : > { %1078 = shalt.err (!%p1075_p9)
}
 0x31f   : > { %869 = dma.vmem_to_hbm [thread:$0]  (%p1292_p6), %s699_s4, 128, %s701_s24, %s686_s6  }
 0x320 PF: > { %s1537_s0 = sld [smem:[#allocation12_spill]]  ;;  %p886_p12 = scmp.ge.s32.totalorder %s1177_s7, 2 }
 0x322   : > { %p880_p13 = pnand %p886_p12, %p1298_p10 }
 0x324   : > { %p881_p11 = pneg %p880_p13 }
 0x326   : > { %s712_s15 = sand.u32 1, %s1537_s0  }
 0x327   : > { %s713_s14 = scalar_lea.sflag [#allocation5], %s712_s15 }
 0x328   : > { %1132 = dma.done.wait (%p881_p11), %s713_s14, 128  }
 0x329   : > { %1134 = vsyncadd (%p881_p11), %s713_s14, 4294967168  ;;  %s23_s7 = sadd.s32 1, %s1177_s7   ;;  %s1539_s20 = smov %s1343_s21 }
 0x32a   : > { %p20_p4 = scmp.ge.s32.totalorder %s23_s7, 6   ;;  %s1540_s9 = sld [smem:[#allocation16_spill]] }
 0x32b   : > { %s1541_s18 = sld [smem:[#allocation17_spill]]  ;;  %s1542_s21 = smov %s1141_s22 }
 0x32c   : > { %s1543_s22 = smov %s1145_s23  ;;  %s1544_s23 = smov %s1340_s8 }
 0x32d   : > { %s1545_s24 = smov %s1153_s25  ;;  %s1546_s25 = smov %s1157_s26 }
 0x32e   : > { %s1547_s26 = smov %s1539_s20  ;;  %s1548_s27 = smov %s1169_s29 }
 0x32f   : > { %s1549_s28 = smov %s1173_s30  ;;  %22 = sbr.rel (!%p20_p4) target bundleno = 17 (0x11), region = 104 }
 0x330   : > { %s1550_s29 = smov %s1540_s9 }
 0x331   : > { %s1551_s30 = smov %s1541_s18 }
 0x334   :  { %719 = vsyncpa [#allocation4], 1 }
 0x335   :  { %721 = vsyncpa [#allocation4 + $0x1], 1 }
 0x336   :  { %722 = vsyncpa [#allocation7], 1 }
 0x337   :  { %723 = vsyncpa [#allocation5], 1 }
 0x338   :  { %725 = vsyncpa [#allocation5 + $0x1], 1 }

</bundles_post_ra>
